<compile_context>
chip_gen: v7x
topology: tpu7x:2x2x1
jax: 0.10.0
libtpu: 0.0.40
codegen_flags: <defaults>
</compile_context>

<pallas_src>
import numpy as np
import jax
import jax.numpy as jnp
from jax.experimental import pallas as pl
from jax.experimental.pallas import tpu as pltpu


def _round_up(x: int, m: int) -> int:
    return (x + m - 1) // m * m


def _sublane_multiple(stream_dtype) -> int:
    itemsize = jnp.dtype(stream_dtype).itemsize
    return {4: 8, 2: 16, 1: 32}.get(itemsize, 8)


def _choose_batch_block(B: int, sub: int, max_tb: int = 256) -> int:
    """Batch rows per block: fill MXU rows first, then split for megacore."""
    Bp = _round_up(B, sub)
    if Bp <= max_tb:
        return Bp
    if Bp <= 2 * max_tb:
        # Two blocks of >=128 rows each so v7x's two TensorCores both get work.
        return _round_up((Bp + 1) // 2, sub)
    return max_tb


def _choose_time_block(T: int, TB: int, H_pad: int, stream_bytes: int,
                       budget_bytes: int) -> int:
    """Recurrence steps per grid step, bounded by a VMEM block budget."""
    per_tt = 4 * TB * H_pad * stream_bytes          # pre + out, double-buffered
    fixed = H_pad * H_pad * stream_bytes + 3 * TB * H_pad * 4
    avail = max(budget_bytes - fixed, 8 * per_tt)
    tt = int(min(64, avail // per_tt, _round_up(T, 8)))
    return max(8, (tt // 8) * 8)


def make_ctrnn_kernel(alpha: float, time_block: int, unroll: int, stream_dtype):
    alpha = float(alpha)
    oneminusalpha = 1.0 - alpha

    def ctrnn_kernel(pre_ref, h0_ref, w_hh_hbm, out_ref, h_scr, w_scr, sem):
        # Grid = (batch_blocks, time_blocks); time is the inner, serial axis.
        t_blk = pl.program_id(1)

        @pl.when(t_blk == 0)
        def _():
            # Fetch W_hh^T once per batch-block (per core) into a
            # single-buffered VMEM scratch; overlap the DMA with the
            # hidden-state carry init.  (Re-fetched per batch block on
            # purpose: a persistent "loaded" flag is unsafe because scratch
            # is not zero-initialized, and the bf16 refetch is cheap.)
            cp = pltpu.make_async_copy(w_hh_hbm, w_scr, sem)
            cp.start()
            h_scr[...] = h0_ref[...]
            cp.wait()

        def step(i, h):
            # Recurrent matmul on the MXU in the streamed dtype, accumulating
            # in f32; relu/blend math stays in f32 (v5e VPU has no bf16 path).
            rec = jnp.dot(h.astype(stream_dtype), w_scr[...],
                          preferred_element_type=jnp.float32)
            pre = pre_ref[i].astype(jnp.float32) + rec
            h_new = h * oneminusalpha + jnp.maximum(pre, 0.0) * alpha
            out_ref[i] = h_new.astype(out_ref.dtype)
            return h_new

        h_scr[...] = jax.lax.fori_loop(0, time_block, step, h_scr[...],
                                       unroll=unroll)

    return ctrnn_kernel


def ctrnn_forward(x, noise, h0, w_in_t, b_in, w_hh_t, b_hh, *, alpha,
                  stream_dtype=jnp.bfloat16,
                  time_block=None, batch_block=None,
                  vmem_block_budget_bytes=40 * 1024 * 1024):
    """x: (T, B, I), noise: (T, B, H), h0: (B, H),
       w_in_t: (I, H), b_in: (1, H), w_hh_t: (H, H), b_hh: (1, H).
       Returns (output (T, B, H) in stream_dtype, final hidden (B, H) f32)."""
    T, B, I = x.shape
    H = h0.shape[1]
    f32 = jnp.float32

    # ---- 1. Block sizes ----------------------------------------------------
    stream_bytes = jnp.dtype(stream_dtype).itemsize
    sub = _sublane_multiple(stream_dtype)
    H_pad = _round_up(H, 128)                      # lane multiple
    TB = batch_block if batch_block is not None else _choose_batch_block(B, sub)
    TB = _round_up(TB, sub)
    TT = time_block if time_block is not None else _choose_time_block(
        T, TB, H_pad, stream_bytes, vmem_block_budget_bytes)
    B_pad = _round_up(max(B, TB), TB)
    T_pad = _round_up(T, TT)

    # ---- 2. Pad inputs, then project directly into the padded layout -------
    x_p = jnp.pad(x.astype(f32), ((0, T_pad - T), (0, B_pad - B), (0, 0)))
    noise_p = jnp.pad(noise.astype(f32),
                      ((0, T_pad - T), (0, B_pad - B), (0, H_pad - H)))
    w_in_p = jnp.pad(w_in_t.astype(f32), ((0, 0), (0, H_pad - H)))
    bias_p = jnp.pad((b_in + b_hh).reshape(1, H).astype(f32),
                     ((0, 0), (0, H_pad - H)))
    h0_p = jnp.pad(h0.astype(f32), ((0, B_pad - B), (0, H_pad - H)))
    w_hh_p = jnp.pad(w_hh_t.astype(f32),
                     ((0, H_pad - H), (0, H_pad - H))).astype(stream_dtype)

    # One big MXU-friendly matmul over all time steps; bias and noise folded
    # in; written once, already padded and in the streamed dtype.
    pre_p = ((x_p.reshape(T_pad * B_pad, I) @ w_in_p + bias_p)
             .reshape(T_pad, B_pad, H_pad) + noise_p).astype(stream_dtype)

    nb = B_pad // TB
    nt = T_pad // TT
    unroll = min(8, TT)

    # ---- 3. VMEM budget (derived, capped for v7x's 64 MiB) -----------------
    block_bytes = TT * TB * H_pad * stream_bytes
    vmem_est = (4 * block_bytes                    # pre + out, double-buffered
                + H_pad * H_pad * stream_bytes     # resident W_hh^T
                + 3 * TB * H_pad * 4)              # h0 block (x2) + h carry
    vmem_limit = int(min(56 * 1024 * 1024,
                         max(2 * vmem_est, 32 * 1024 * 1024)))

    kernel = make_ctrnn_kernel(alpha, TT, unroll, stream_dtype)

    out_p = pl.pallas_call(
        kernel,
        out_shape=jax.ShapeDtypeStruct((T_pad, B_pad, H_pad), stream_dtype),
        grid_spec=pltpu.PrefetchScalarGridSpec(
            num_scalar_prefetch=0,
            grid=(nb, nt),
            in_specs=[
                pl.BlockSpec((TT, TB, H_pad), lambda b, t: (t, b, 0)),  # pre
                pl.BlockSpec((TB, H_pad), lambda b, t: (b, 0)),         # h0
                pl.BlockSpec(memory_space=pl.ANY),                      # W_hh^T
            ],
            out_specs=pl.BlockSpec((TT, TB, H_pad), lambda b, t: (t, b, 0)),
            scratch_shapes=[
                pltpu.VMEM((TB, H_pad), jnp.float32),      # hidden carry (f32)
                pltpu.VMEM((H_pad, H_pad), stream_dtype),  # resident W_hh^T
                pltpu.SemaphoreType.DMA(()),
            ],
        ),
        compiler_params=pltpu.CompilerParams(
            dimension_semantics=("parallel", "arbitrary"),
            vmem_limit_bytes=vmem_limit),
    )(pre_p, h0_p, w_hh_p)

    # h_last is read straight from the padded buffer (no full (T,B,H) slice
    # needed for it); the full output slice only serves the module's API.
    h_last = out_p[T - 1, :B, :H].astype(jnp.float32)
    out = out_p[:T, :B, :H]
    return out, h_last


def reference_ctrnn(x, noise, h0, w_in_t, b_in, w_hh_t, b_hh, *, alpha):
    """Pure-JAX reference identical to the PyTorch forward semantics."""
    oneminusalpha = 1.0 - alpha

    def step(h, inputs):
        x_t, n_t = inputs
        pre = x_t @ w_in_t + b_in + h @ w_hh_t + b_hh + n_t
        h_new = h * oneminusalpha + jax.nn.relu(pre) * alpha
        return h_new, h_new

    h_last, out = jax.lax.scan(step, h0, (x, noise))
    return out, h_last


if __name__ == "__main__":
    # Small shapes consistent with the module's forward signature.
    seq_len, batch, input_size, hidden_size = 8, 2, 4, 32
    dt, sigma_rec = 20.0, 0.05
    tau = 100.0
    alpha = dt / tau
    sigma = float(np.sqrt(2.0 / alpha) * sigma_rec)

    key = jax.random.PRNGKey(0)
    k_x, k_win, k_bin, k_bhh, k_noise, k_h0 = jax.random.split(key, 6)

    # Deterministic parameter init (shapes follow nn.Linear in the module).
    # input2h: default Linear init -> uniform(-1/sqrt(in), 1/sqrt(in)).
    bound_in = 1.0 / np.sqrt(input_size)
    w_in = jax.random.uniform(k_win, (hidden_size, input_size),
                              minval=-bound_in, maxval=bound_in,
                              dtype=jnp.float32)
    b_in = jax.random.uniform(k_bin, (hidden_size,),
                              minval=-bound_in, maxval=bound_in,
                              dtype=jnp.float32)
    # h2h: weight = 0.5 * I (reset_parameters), bias default Linear init.
    w_hh = 0.5 * jnp.eye(hidden_size, dtype=jnp.float32)
    bound_hh = 1.0 / np.sqrt(hidden_size)
    b_hh = jax.random.uniform(k_bhh, (hidden_size,),
                              minval=-bound_hh, maxval=bound_hh,
                              dtype=jnp.float32)

    # Inputs.
    x = jax.random.normal(k_x, (seq_len, batch, input_size), dtype=jnp.float32)
    h0 = jnp.zeros((batch, hidden_size), dtype=jnp.float32)  # init_hidden

    # Pre-sample the recurrent noise: torch.normal(mean=0, std=sigma).
    noise = sigma * jax.random.normal(
        k_noise, (seq_len, batch, hidden_size), dtype=jnp.float32)

    # Transpose weights so the math is x @ W^T == x @ w_t.
    w_in_t = w_in.T                     # (I, H)
    w_hh_t = w_hh.T                     # (H, H)
    b_in_row = b_in[None, :]            # (1, H)
    b_hh_row = b_hh[None, :]            # (1, H)

    # Pure-JAX reference.
    out_ref, h_ref = reference_ctrnn(x, noise, h0, w_in_t, b_in_row,
                                     w_hh_t, b_hh_row, alpha=alpha)

    # --- Default (bf16-streamed, performance path) --------------------------
    out_bf16, h_bf16 = ctrnn_forward(x, noise, h0, w_in_t, b_in_row,
                                     w_hh_t, b_hh_row, alpha=alpha)
    jax.block_until_ready((out_bf16, h_bf16))
    np.testing.assert_allclose(np.asarray(out_bf16, dtype=np.float32),
                               np.asarray(out_ref), rtol=2e-2, atol=2e-2)
    np.testing.assert_allclose(np.asarray(h_bf16),
                               np.asarray(h_ref), rtol=2e-2, atol=2e-2)

    # --- f32 streaming mode: tight numerical check of the kernel math -------
    out_f32, h_f32 = ctrnn_forward(x, noise, h0, w_in_t, b_in_row,
                                   w_hh_t, b_hh_row, alpha=alpha,
                                   stream_dtype=jnp.float32)
    jax.block_until_ready((out_f32, h_f32))
    np.testing.assert_allclose(np.asarray(out_f32), np.asarray(out_ref),
                               rtol=1e-5, atol=1e-5)
    np.testing.assert_allclose(np.asarray(h_f32), np.asarray(h_ref),
                               rtol=1e-5, atol=1e-5)

    print("KERNEL_OK")
</pallas_src>

<mosaic_0001>
module attributes {stable_mosaic.version = 11 : i64} {
  func.func @ctrnn_kernel(%arg0: i32, %arg1: i32, %arg2: memref<8x16x128xbf16, #tpu.memory_space<vmem>>, %arg3: memref<16x128xf32, #tpu.memory_space<vmem>>, %arg4: memref<128x128xbf16, #tpu.memory_space<any>>, %arg5: memref<8x16x128xbf16, #tpu.memory_space<vmem>>, %arg6: memref<16x128xf32, #tpu.memory_space<vmem>>, %arg7: memref<128x128xbf16, #tpu.memory_space<vmem>>, %arg8: memref<!tpu.dma_semaphore, #tpu.memory_space<semaphore_mem>>) attributes {dimension_semantics = [#tpu.dimension_semantics<parallel>, #tpu.dimension_semantics<arbitrary>], iteration_bounds = array<i64: 1, 1>, scalar_prefetch = 0 : i64, scratch_operands = 3 : i64, tpu.core_type = #tpu.core_type<tc>, window_params = [{transform_indices = @transform_0, window_bounds = array<i64: 8, 16, 128>}, {transform_indices = @transform_1, window_bounds = array<i64: 16, 128>}, {}, {transform_indices = @transform_3, window_bounds = array<i64: 8, 16, 128>}]} {
    %c0_i32 = arith.constant 0 : i32
    %0 = arith.cmpi eq, %arg1, %c0_i32 : i32
    %1 = arith.extui %0 : i1 to i32
    %c0_i32_0 = arith.constant 0 : i32
    %2 = arith.cmpi ne, %1, %c0_i32_0 : i32
    scf.if %2 {
      tpu.enqueue_dma source(%arg4 : memref<128x128xbf16, #tpu.memory_space<any>>) target(%arg7 : memref<128x128xbf16, #tpu.memory_space<vmem>>) target_semaphore(%arg8 : memref<!tpu.dma_semaphore, #tpu.memory_space<semaphore_mem>>)
      %c0_84 = arith.constant 0 : index
      %c0_85 = arith.constant 0 : index
      %165 = vector.load %arg3[%c0_84, %c0_85] : memref<16x128xf32, #tpu.memory_space<vmem>>, vector<16x128xf32>
      %c0_86 = arith.constant 0 : index
      %c0_87 = arith.constant 0 : index
      %166 = vector.load %arg6[%c0_86, %c0_87] : memref<16x128xf32, #tpu.memory_space<vmem>>, vector<16x128xf32>
      tpu.vector_store %arg6[%c0_86, %c0_87], %165 {strides = array<i32>} : memref<16x128xf32, #tpu.memory_space<vmem>>, vector<16x128xf32>,
      tpu.wait_dma2 semaphore(%arg8 : memref<!tpu.dma_semaphore, #tpu.memory_space<semaphore_mem>>) src(%arg4 : memref<128x128xbf16, #tpu.memory_space<any>>) dst(%arg7 : memref<128x128xbf16, #tpu.memory_space<vmem>>)
    } else {
    }
    %c0 = arith.constant 0 : index
    %c0_1 = arith.constant 0 : index
    %3 = vector.load %arg6[%c0, %c0_1] : memref<16x128xf32, #tpu.memory_space<vmem>>, vector<16x128xf32>
    %c0_i32_2 = arith.constant 0 : i32
    %4 = arith.truncf %3 : vector<16x128xf32> to vector<16x128xbf16>
    %c0_3 = arith.constant 0 : index
    %c0_4 = arith.constant 0 : index
    %5 = vector.load %arg7[%c0_3, %c0_4] : memref<128x128xbf16, #tpu.memory_space<vmem>>, vector<128x128xbf16>
    %cst = arith.constant dense<0.000000e+00> : vector<16x128xf32>
    %6 = tpu.matmul %4, %5, %cst {dimension_numbers = #tpu.dot_dimension_numbers<[1], [0], [0], [1], [0, 0, 1, 1], [], []>} : vector<16x128xbf16>, vector<128x128xbf16>, vector<16x128xf32> -> vector<16x128xf32>
    %7 = arith.index_cast %c0_i32_2 : i32 to index
    %c0_5 = arith.constant 0 : index
    %c0_6 = arith.constant 0 : index
    %8 = vector.load %arg2[%7, %c0_5, %c0_6] : memref<8x16x128xbf16, #tpu.memory_space<vmem>>, vector<1x16x128xbf16>
    %9 = vector.shape_cast %8 : vector<1x16x128xbf16> to vector<16x128xbf16>
    %10 = arith.extf %9 : vector<16x128xbf16> to vector<16x128xf32>
    %11 = arith.addf %10, %6 : vector<16x128xf32>
    %cst_7 = arith.constant 8.000000e-01 : f32
    %12 = vector.broadcast %cst_7 : f32 to vector<16x128xf32>
    %13 = arith.mulf %3, %12 : vector<16x128xf32>
    %cst_8 = arith.constant 0.000000e+00 : f32
    %14 = vector.broadcast %cst_8 : f32 to vector<16x128xf32>
    %15 = arith.maximumf %11, %14 : vector<16x128xf32>
    %cst_9 = arith.constant 2.000000e-01 : f32
    %16 = vector.broadcast %cst_9 : f32 to vector<16x128xf32>
    %17 = arith.mulf %15, %16 : vector<16x128xf32>
    %18 = arith.addf %13, %17 : vector<16x128xf32>
    %19 = arith.truncf %18 : vector<16x128xf32> to vector<16x128xbf16>
    %20 = arith.index_cast %c0_i32_2 : i32 to index
    %c0_10 = arith.constant 0 : index
    %c0_11 = arith.constant 0 : index
    %21 = vector.load %arg5[%20, %c0_10, %c0_11] : memref<8x16x128xbf16, #tpu.memory_space<vmem>>, vector<1x16x128xbf16>
    %22 = vector.shape_cast %21 : vector<1x16x128xbf16> to vector<16x128xbf16>
    %23 = vector.shape_cast %19 : vector<16x128xbf16> to vector<1x16x128xbf16>
    tpu.vector_store %arg5[%20, %c0_10, %c0_11], %23 {strides = array<i32>} : memref<8x16x128xbf16, #tpu.memory_space<vmem>>, vector<1x16x128xbf16>,
    %c1_i32 = arith.constant 1 : i32
    %24 = arith.truncf %18 : vector<16x128xf32> to vector<16x128xbf16>
    %c0_12 = arith.constant 0 : index
    %c0_13 = arith.constant 0 : index
    %25 = vector.load %arg7[%c0_12, %c0_13] : memref<128x128xbf16, #tpu.memory_space<vmem>>, vector<128x128xbf16>
    %cst_14 = arith.constant dense<0.000000e+00> : vector<16x128xf32>
    %26 = tpu.matmul %24, %25, %cst_14 {dimension_numbers = #tpu.dot_dimension_numbers<[1], [0], [0], [1], [0, 0, 1, 1], [], []>} : vector<16x128xbf16>, vector<128x128xbf16>, vector<16x128xf32> -> vector<16x128xf32>
    %27 = arith.index_cast %c1_i32 : i32 to index
    %c0_15 = arith.constant 0 : index
    %c0_16 = arith.constant 0 : index
    %28 = vector.load %arg2[%27, %c0_15, %c0_16] : memref<8x16x128xbf16, #tpu.memory_space<vmem>>, vector<1x16x128xbf16>
    %29 = vector.shape_cast %28 : vector<1x16x128xbf16> to vector<16x128xbf16>
    %30 = arith.extf %29 : vector<16x128xbf16> to vector<16x128xf32>
    %31 = arith.addf %30, %26 : vector<16x128xf32>
    %cst_17 = arith.constant 8.000000e-01 : f32
    %32 = vector.broadcast %cst_17 : f32 to vector<16x128xf32>
    %33 = arith.mulf %18, %32 : vector<16x128xf32>
    %cst_18 = arith.constant 0.000000e+00 : f32
    %34 = vector.broadcast %cst_18 : f32 to vector<16x128xf32>
    %35 = arith.maximumf %31, %34 : vector<16x128xf32>
    %cst_19 = arith.constant 2.000000e-01 : f32
    %36 = vector.broadcast %cst_19 : f32 to vector<16x128xf32>
    %37 = arith.mulf %35, %36 : vector<16x128xf32>
    %38 = arith.addf %33, %37 : vector<16x128xf32>
    %39 = arith.truncf %38 : vector<16x128xf32> to vector<16x128xbf16>
    %40 = arith.index_cast %c1_i32 : i32 to index
    %c0_20 = arith.constant 0 : index
    %c0_21 = arith.constant 0 : index
    %41 = vector.load %arg5[%40, %c0_20, %c0_21] : memref<8x16x128xbf16, #tpu.memory_space<vmem>>, vector<1x16x128xbf16>
    %42 = vector.shape_cast %41 : vector<1x16x128xbf16> to vector<16x128xbf16>
    %43 = vector.shape_cast %39 : vector<16x128xbf16> to vector<1x16x128xbf16>
    tpu.vector_store %arg5[%40, %c0_20, %c0_21], %43 {strides = array<i32>} : memref<8x16x128xbf16, #tpu.memory_space<vmem>>, vector<1x16x128xbf16>,
    %c2_i32 = arith.constant 2 : i32
    %44 = arith.truncf %38 : vector<16x128xf32> to vector<16x128xbf16>
    %c0_22 = arith.constant 0 : index
    %c0_23 = arith.constant 0 : index
    %45 = vector.load %arg7[%c0_22, %c0_23] : memref<128x128xbf16, #tpu.memory_space<vmem>>, vector<128x128xbf16>
    %cst_24 = arith.constant dense<0.000000e+00> : vector<16x128xf32>
    %46 = tpu.matmul %44, %45, %cst_24 {dimension_numbers = #tpu.dot_dimension_numbers<[1], [0], [0], [1], [0, 0, 1, 1], [], []>} : vector<16x128xbf16>, vector<128x128xbf16>, vector<16x128xf32> -> vector<16x128xf32>
    %47 = arith.index_cast %c2_i32 : i32 to index
    %c0_25 = arith.constant 0 : index
    %c0_26 = arith.constant 0 : index
    %48 = vector.load %arg2[%47, %c0_25, %c0_26] : memref<8x16x128xbf16, #tpu.memory_space<vmem>>, vector<1x16x128xbf16>
    %49 = vector.shape_cast %48 : vector<1x16x128xbf16> to vector<16x128xbf16>
    %50 = arith.extf %49 : vector<16x128xbf16> to vector<16x128xf32>
    %51 = arith.addf %50, %46 : vector<16x128xf32>
    %cst_27 = arith.constant 8.000000e-01 : f32
    %52 = vector.broadcast %cst_27 : f32 to vector<16x128xf32>
    %53 = arith.mulf %38, %52 : vector<16x128xf32>
    %cst_28 = arith.constant 0.000000e+00 : f32
    %54 = vector.broadcast %cst_28 : f32 to vector<16x128xf32>
    %55 = arith.maximumf %51, %54 : vector<16x128xf32>
    %cst_29 = arith.constant 2.000000e-01 : f32
    %56 = vector.broadcast %cst_29 : f32 to vector<16x128xf32>
    %57 = arith.mulf %55, %56 : vector<16x128xf32>
    %58 = arith.addf %53, %57 : vector<16x128xf32>
    %59 = arith.truncf %58 : vector<16x128xf32> to vector<16x128xbf16>
    %60 = arith.index_cast %c2_i32 : i32 to index
    %c0_30 = arith.constant 0 : index
    %c0_31 = arith.constant 0 : index
    %61 = vector.load %arg5[%60, %c0_30, %c0_31] : memref<8x16x128xbf16, #tpu.memory_space<vmem>>, vector<1x16x128xbf16>
    %62 = vector.shape_cast %61 : vector<1x16x128xbf16> to vector<16x128xbf16>
    %63 = vector.shape_cast %59 : vector<16x128xbf16> to vector<1x16x128xbf16>
    tpu.vector_store %arg5[%60, %c0_30, %c0_31], %63 {strides = array<i32>} : memref<8x16x128xbf16, #tpu.memory_space<vmem>>, vector<1x16x128xbf16>,
    %c3_i32 = arith.constant 3 : i32
    %64 = arith.truncf %58 : vector<16x128xf32> to vector<16x128xbf16>
    %c0_32 = arith.constant 0 : index
    %c0_33 = arith.constant 0 : index
    %65 = vector.load %arg7[%c0_32, %c0_33] : memref<128x128xbf16, #tpu.memory_space<vmem>>, vector<128x128xbf16>
    %cst_34 = arith.constant dense<0.000000e+00> : vector<16x128xf32>
    %66 = tpu.matmul %64, %65, %cst_34 {dimension_numbers = #tpu.dot_dimension_numbers<[1], [0], [0], [1], [0, 0, 1, 1], [], []>} : vector<16x128xbf16>, vector<128x128xbf16>, vector<16x128xf32> -> vector<16x128xf32>
    %67 = arith.index_cast %c3_i32 : i32 to index
    %c0_35 = arith.constant 0 : index
    %c0_36 = arith.constant 0 : index
    %68 = vector.load %arg2[%67, %c0_35, %c0_36] : memref<8x16x128xbf16, #tpu.memory_space<vmem>>, vector<1x16x128xbf16>
    %69 = vector.shape_cast %68 : vector<1x16x128xbf16> to vector<16x128xbf16>
    %70 = arith.extf %69 : vector<16x128xbf16> to vector<16x128xf32>
    %71 = arith.addf %70, %66 : vector<16x128xf32>
    %cst_37 = arith.constant 8.000000e-01 : f32
    %72 = vector.broadcast %cst_37 : f32 to vector<16x128xf32>
    %73 = arith.mulf %58, %72 : vector<16x128xf32>
    %cst_38 = arith.constant 0.000000e+00 : f32
    %74 = vector.broadcast %cst_38 : f32 to vector<16x128xf32>
    %75 = arith.maximumf %71, %74 : vector<16x128xf32>
    %cst_39 = arith.constant 2.000000e-01 : f32
    %76 = vector.broadcast %cst_39 : f32 to vector<16x128xf32>
    %77 = arith.mulf %75, %76 : vector<16x128xf32>
    %78 = arith.addf %73, %77 : vector<16x128xf32>
    %79 = arith.truncf %78 : vector<16x128xf32> to vector<16x128xbf16>
    %80 = arith.index_cast %c3_i32 : i32 to index
    %c0_40 = arith.constant 0 : index
    %c0_41 = arith.constant 0 : index
    %81 = vector.load %arg5[%80, %c0_40, %c0_41] : memref<8x16x128xbf16, #tpu.memory_space<vmem>>, vector<1x16x128xbf16>
    %82 = vector.shape_cast %81 : vector<1x16x128xbf16> to vector<16x128xbf16>
    %83 = vector.shape_cast %79 : vector<16x128xbf16> to vector<1x16x128xbf16>
    tpu.vector_store %arg5[%80, %c0_40, %c0_41], %83 {strides = array<i32>} : memref<8x16x128xbf16, #tpu.memory_space<vmem>>, vector<1x16x128xbf16>,
    %c4_i32 = arith.constant 4 : i32
    %84 = arith.truncf %78 : vector<16x128xf32> to vector<16x128xbf16>
    %c0_42 = arith.constant 0 : index
    %c0_43 = arith.constant 0 : index
    %85 = vector.load %arg7[%c0_42, %c0_43] : memref<128x128xbf16, #tpu.memory_space<vmem>>, vector<128x128xbf16>
    %cst_44 = arith.constant dense<0.000000e+00> : vector<16x128xf32>
    %86 = tpu.matmul %84, %85, %cst_44 {dimension_numbers = #tpu.dot_dimension_numbers<[1], [0], [0], [1], [0, 0, 1, 1], [], []>} : vector<16x128xbf16>, vector<128x128xbf16>, vector<16x128xf32> -> vector<16x128xf32>
    %87 = arith.index_cast %c4_i32 : i32 to index
    %c0_45 = arith.constant 0 : index
    %c0_46 = arith.constant 0 : index
    %88 = vector.load %arg2[%87, %c0_45, %c0_46] : memref<8x16x128xbf16, #tpu.memory_space<vmem>>, vector<1x16x128xbf16>
    %89 = vector.shape_cast %88 : vector<1x16x128xbf16> to vector<16x128xbf16>
    %90 = arith.extf %89 : vector<16x128xbf16> to vector<16x128xf32>
    %91 = arith.addf %90, %86 : vector<16x128xf32>
    %cst_47 = arith.constant 8.000000e-01 : f32
    %92 = vector.broadcast %cst_47 : f32 to vector<16x128xf32>
    %93 = arith.mulf %78, %92 : vector<16x128xf32>
    %cst_48 = arith.constant 0.000000e+00 : f32
    %94 = vector.broadcast %cst_48 : f32 to vector<16x128xf32>
    %95 = arith.maximumf %91, %94 : vector<16x128xf32>
    %cst_49 = arith.constant 2.000000e-01 : f32
    %96 = vector.broadcast %cst_49 : f32 to vector<16x128xf32>
    %97 = arith.mulf %95, %96 : vector<16x128xf32>
    %98 = arith.addf %93, %97 : vector<16x128xf32>
    %99 = arith.truncf %98 : vector<16x128xf32> to vector<16x128xbf16>
    %100 = arith.index_cast %c4_i32 : i32 to index
    %c0_50 = arith.constant 0 : index
    %c0_51 = arith.constant 0 : index
    %101 = vector.load %arg5[%100, %c0_50, %c0_51] : memref<8x16x128xbf16, #tpu.memory_space<vmem>>, vector<1x16x128xbf16>
    %102 = vector.shape_cast %101 : vector<1x16x128xbf16> to vector<16x128xbf16>
    %103 = vector.shape_cast %99 : vector<16x128xbf16> to vector<1x16x128xbf16>
    tpu.vector_store %arg5[%100, %c0_50, %c0_51], %103 {strides = array<i32>} : memref<8x16x128xbf16, #tpu.memory_space<vmem>>, vector<1x16x128xbf16>,
    %c5_i32 = arith.constant 5 : i32
    %104 = arith.truncf %98 : vector<16x128xf32> to vector<16x128xbf16>
    %c0_52 = arith.constant 0 : index
    %c0_53 = arith.constant 0 : index
    %105 = vector.load %arg7[%c0_52, %c0_53] : memref<128x128xbf16, #tpu.memory_space<vmem>>, vector<128x128xbf16>
    %cst_54 = arith.constant dense<0.000000e+00> : vector<16x128xf32>
    %106 = tpu.matmul %104, %105, %cst_54 {dimension_numbers = #tpu.dot_dimension_numbers<[1], [0], [0], [1], [0, 0, 1, 1], [], []>} : vector<16x128xbf16>, vector<128x128xbf16>, vector<16x128xf32> -> vector<16x128xf32>
    %107 = arith.index_cast %c5_i32 : i32 to index
    %c0_55 = arith.constant 0 : index
    %c0_56 = arith.constant 0 : index
    %108 = vector.load %arg2[%107, %c0_55, %c0_56] : memref<8x16x128xbf16, #tpu.memory_space<vmem>>, vector<1x16x128xbf16>
    %109 = vector.shape_cast %108 : vector<1x16x128xbf16> to vector<16x128xbf16>
    %110 = arith.extf %109 : vector<16x128xbf16> to vector<16x128xf32>
    %111 = arith.addf %110, %106 : vector<16x128xf32>
    %cst_57 = arith.constant 8.000000e-01 : f32
    %112 = vector.broadcast %cst_57 : f32 to vector<16x128xf32>
    %113 = arith.mulf %98, %112 : vector<16x128xf32>
    %cst_58 = arith.constant 0.000000e+00 : f32
    %114 = vector.broadcast %cst_58 : f32 to vector<16x128xf32>
    %115 = arith.maximumf %111, %114 : vector<16x128xf32>
    %cst_59 = arith.constant 2.000000e-01 : f32
    %116 = vector.broadcast %cst_59 : f32 to vector<16x128xf32>
    %117 = arith.mulf %115, %116 : vector<16x128xf32>
    %118 = arith.addf %113, %117 : vector<16x128xf32>
    %119 = arith.truncf %118 : vector<16x128xf32> to vector<16x128xbf16>
    %120 = arith.index_cast %c5_i32 : i32 to index
    %c0_60 = arith.constant 0 : index
    %c0_61 = arith.constant 0 : index
    %121 = vector.load %arg5[%120, %c0_60, %c0_61] : memref<8x16x128xbf16, #tpu.memory_space<vmem>>, vector<1x16x128xbf16>
    %122 = vector.shape_cast %121 : vector<1x16x128xbf16> to vector<16x128xbf16>
    %123 = vector.shape_cast %119 : vector<16x128xbf16> to vector<1x16x128xbf16>
    tpu.vector_store %arg5[%120, %c0_60, %c0_61], %123 {strides = array<i32>} : memref<8x16x128xbf16, #tpu.memory_space<vmem>>, vector<1x16x128xbf16>,
    %c6_i32 = arith.constant 6 : i32
    %124 = arith.truncf %118 : vector<16x128xf32> to vector<16x128xbf16>
    %c0_62 = arith.constant 0 : index
    %c0_63 = arith.constant 0 : index
    %125 = vector.load %arg7[%c0_62, %c0_63] : memref<128x128xbf16, #tpu.memory_space<vmem>>, vector<128x128xbf16>
    %cst_64 = arith.constant dense<0.000000e+00> : vector<16x128xf32>
    %126 = tpu.matmul %124, %125, %cst_64 {dimension_numbers = #tpu.dot_dimension_numbers<[1], [0], [0], [1], [0, 0, 1, 1], [], []>} : vector<16x128xbf16>, vector<128x128xbf16>, vector<16x128xf32> -> vector<16x128xf32>
    %127 = arith.index_cast %c6_i32 : i32 to index
    %c0_65 = arith.constant 0 : index
    %c0_66 = arith.constant 0 : index
    %128 = vector.load %arg2[%127, %c0_65, %c0_66] : memref<8x16x128xbf16, #tpu.memory_space<vmem>>, vector<1x16x128xbf16>
    %129 = vector.shape_cast %128 : vector<1x16x128xbf16> to vector<16x128xbf16>
    %130 = arith.extf %129 : vector<16x128xbf16> to vector<16x128xf32>
    %131 = arith.addf %130, %126 : vector<16x128xf32>
    %cst_67 = arith.constant 8.000000e-01 : f32
    %132 = vector.broadcast %cst_67 : f32 to vector<16x128xf32>
    %133 = arith.mulf %118, %132 : vector<16x128xf32>
    %cst_68 = arith.constant 0.000000e+00 : f32
    %134 = vector.broadcast %cst_68 : f32 to vector<16x128xf32>
    %135 = arith.maximumf %131, %134 : vector<16x128xf32>
    %cst_69 = arith.constant 2.000000e-01 : f32
    %136 = vector.broadcast %cst_69 : f32 to vector<16x128xf32>
    %137 = arith.mulf %135, %136 : vector<16x128xf32>
    %138 = arith.addf %133, %137 : vector<16x128xf32>
    %139 = arith.truncf %138 : vector<16x128xf32> to vector<16x128xbf16>
    %140 = arith.index_cast %c6_i32 : i32 to index
    %c0_70 = arith.constant 0 : index
    %c0_71 = arith.constant 0 : index
    %141 = vector.load %arg5[%140, %c0_70, %c0_71] : memref<8x16x128xbf16, #tpu.memory_space<vmem>>, vector<1x16x128xbf16>
    %142 = vector.shape_cast %141 : vector<1x16x128xbf16> to vector<16x128xbf16>
    %143 = vector.shape_cast %139 : vector<16x128xbf16> to vector<1x16x128xbf16>
    tpu.vector_store %arg5[%140, %c0_70, %c0_71], %143 {strides = array<i32>} : memref<8x16x128xbf16, #tpu.memory_space<vmem>>, vector<1x16x128xbf16>,
    %c7_i32 = arith.constant 7 : i32
    %144 = arith.truncf %138 : vector<16x128xf32> to vector<16x128xbf16>
    %c0_72 = arith.constant 0 : index
    %c0_73 = arith.constant 0 : index
    %145 = vector.load %arg7[%c0_72, %c0_73] : memref<128x128xbf16, #tpu.memory_space<vmem>>, vector<128x128xbf16>
    %cst_74 = arith.constant dense<0.000000e+00> : vector<16x128xf32>
    %146 = tpu.matmul %144, %145, %cst_74 {dimension_numbers = #tpu.dot_dimension_numbers<[1], [0], [0], [1], [0, 0, 1, 1], [], []>} : vector<16x128xbf16>, vector<128x128xbf16>, vector<16x128xf32> -> vector<16x128xf32>
    %147 = arith.index_cast %c7_i32 : i32 to index
    %c0_75 = arith.constant 0 : index
    %c0_76 = arith.constant 0 : index
    %148 = vector.load %arg2[%147, %c0_75, %c0_76] : memref<8x16x128xbf16, #tpu.memory_space<vmem>>, vector<1x16x128xbf16>
    %149 = vector.shape_cast %148 : vector<1x16x128xbf16> to vector<16x128xbf16>
    %150 = arith.extf %149 : vector<16x128xbf16> to vector<16x128xf32>
    %151 = arith.addf %150, %146 : vector<16x128xf32>
    %cst_77 = arith.constant 8.000000e-01 : f32
    %152 = vector.broadcast %cst_77 : f32 to vector<16x128xf32>
    %153 = arith.mulf %138, %152 : vector<16x128xf32>
    %cst_78 = arith.constant 0.000000e+00 : f32
    %154 = vector.broadcast %cst_78 : f32 to vector<16x128xf32>
    %155 = arith.maximumf %151, %154 : vector<16x128xf32>
    %cst_79 = arith.constant 2.000000e-01 : f32
    %156 = vector.broadcast %cst_79 : f32 to vector<16x128xf32>
    %157 = arith.mulf %155, %156 : vector<16x128xf32>
    %158 = arith.addf %153, %157 : vector<16x128xf32>
    %159 = arith.truncf %158 : vector<16x128xf32> to vector<16x128xbf16>
    %160 = arith.index_cast %c7_i32 : i32 to index
    %c0_80 = arith.constant 0 : index
    %c0_81 = arith.constant 0 : index
    %161 = vector.load %arg5[%160, %c0_80, %c0_81] : memref<8x16x128xbf16, #tpu.memory_space<vmem>>, vector<1x16x128xbf16>
    %162 = vector.shape_cast %161 : vector<1x16x128xbf16> to vector<16x128xbf16>
    %163 = vector.shape_cast %159 : vector<16x128xbf16> to vector<1x16x128xbf16>
    tpu.vector_store %arg5[%160, %c0_80, %c0_81], %163 {strides = array<i32>} : memref<8x16x128xbf16, #tpu.memory_space<vmem>>, vector<1x16x128xbf16>,
    %c8_i32 = arith.constant 8 : i32
    %c0_82 = arith.constant 0 : index
    %c0_83 = arith.constant 0 : index
    %164 = vector.load %arg6[%c0_82, %c0_83] : memref<16x128xf32, #tpu.memory_space<vmem>>, vector<16x128xf32>
    tpu.vector_store %arg6[%c0_82, %c0_83], %158 {strides = array<i32>} : memref<16x128xf32, #tpu.memory_space<vmem>>, vector<16x128xf32>,
    return
  }
  func.func @transform_0(%arg0: i32, %arg1: i32) -> (i32, i32, i32) {
    %c0_i32 = arith.constant 0 : i32
    %c0_i32_0 = arith.constant 0 : i32
    return %arg1, %arg0, %c0_i32 : i32, i32, i32
  }
  func.func @transform_1(%arg0: i32, %arg1: i32) -> (i32, i32) {
    %c0_i32 = arith.constant 0 : i32
    %c0_i32_0 = arith.constant 0 : i32
    return %arg0, %c0_i32 : i32, i32
  }
  func.func @transform_3(%arg0: i32, %arg1: i32) -> (i32, i32, i32) {
    %c0_i32 = arith.constant 0 : i32
    %c0_i32_0 = arith.constant 0 : i32
    return %arg1, %arg0, %c0_i32 : i32, i32, i32
  }
}

</mosaic_0001>

<bundles_post_ra>
// kernel: tpu_custom_call.1
= control target key start
LH: loop header
LB: loop body
LE: loop exit
PB: predicated region body
PF: predicated region fallthrough
CT: control target
= control target key end

     0   :  { %8 = vsyncpa [#allocation6], 0  ;;  %s1387_s0 = inlined_call_operand.hbm [shape: bf16[8,16,128], index: 0, kind: input, shape index: {}]   ;;  %s1388_s1 = inlined_call_operand.hbm [shape: f32[16,128], index: 1, kind: input, shape index: {}]   ;;  %s1389_s2 = inlined_call_operand.hbm [shape: bf16[128,128], index: 2, kind: input, shape index: {}]   ;;  %s1390_s3 = inlined_call_operand.hbm [shape: bf16[8,16,128], index: 3, kind: output, shape index: {}]  }
   0x1   :  { %9 = vsyncpa [#allocation9], 0 }
   0x2   :  { %10 = vsyncpa [#allocation7], 0  ;;  %s1135_s12 = smov [#allocation5]   ;;  %s1039_s16 = scalar_lea.hbm %s1387_s0, 1024 }
   0x3   :  { %s16_s13 = sshll.u32 %s1135_s12, 4  ;;  %p1040_p0 = scmp.ne.s32.totalorder %s1387_s0, %s1039_s16  ;;  %s17_s13 = int_to_ptr.vmem [resolvable:$true] %s16_s13 }
   0x4   :  { %p1043_p1 = scmp.lt.u32.totalorder %s1039_s16, %s1387_s0 }
   0x6   :  { %p1045_p2 = pnand %p1043_p1, %p1040_p0 }
   0x8   :  { %1048 = shalt.err (!%p1045_p2)
}
   0x9   :  { %s1049_s21 = scalar_lea.vmem %s17_s13, 1024  ;;  %p1054_p4 = scmp.lt.s32.totalorder %s17_s13, %s17_s13 }
   0xa   :  { %p1050_p3 = scmp.ne.s32.totalorder %s17_s13, %s1049_s21  ;;  %p1055_p5 = scmp.lt.s32.totalorder %s1049_s21, %s1049_s21 }
   0xc   :  { %p1056_p6 = por %p1055_p5, %p1054_p4 }
   0xe   :  { %p1057_p7 = pnand %p1056_p6, %p1050_p3 }
  0x10   :  { %1060 = shalt.err (!%p1057_p7)
}
  0x11   :  { %s1136_s22 = smov 64   ;;  %s1137_s23 = smov 4  }
  0x12   :  { %22 = dma.hbm_to_vmem [thread:$0]  %s1387_s0, 1024, %s17_s13, [#allocation6], %s1136_s22, %s1136_s22, %s1137_s23  }
  0x13   :  { %s1138_s26 = smov [#allocation8]   ;;  %s1061_s30 = scalar_lea.hbm %s1388_s1, 256 }
  0x14   :  { %s28_s27 = sshll.u32 %s1138_s26, 4  ;;  %p1062_p8 = scmp.ne.s32.totalorder %s1388_s1, %s1061_s30  ;;  %s29_s27 = int_to_ptr.vmem [resolvable:$true] %s28_s27 }
  0x15   :  { %p1065_p9 = scmp.lt.u32.totalorder %s1061_s30, %s1388_s1 }
  0x17   :  { %p1067_p10 = pnand %p1065_p9, %p1062_p8 }
  0x19   :  { %1070 = shalt.err (!%p1067_p10)
}
  0x1a   :  { %s1071_s8 = scalar_lea.vmem %s29_s27, 256  ;;  %p1076_p12 = scmp.lt.s32.totalorder %s29_s27, %s29_s27 }
  0x1b   :  { %p1072_p11 = scmp.ne.s32.totalorder %s29_s27, %s1071_s8  ;;  %p1077_p13 = scmp.lt.s32.totalorder %s1071_s8, %s1071_s8 }
  0x1d   :  { %p1078_p0 = por %p1077_p13, %p1076_p12 }
  0x1f   :  { %p1079_p1 = pnand %p1078_p0, %p1072_p11 }
  0x21   :  { %1082 = shalt.err (!%p1079_p1)
}
  0x22   :  { %s1139_s0 = smov 128   ;;  %s1140_s9 = smov 8  }
  0x23   :  { %34 = dma.hbm_to_vmem [thread:$0]  %s1388_s1, 256, %s29_s27, [#allocation9], %s1139_s0, %s1139_s0, %s1140_s9  }
  0x24   :  { %1127 = dma.done.wait [#allocation6], 1024  }
  0x25   :  { %1128 = vsyncadd [#allocation6], 4294966272 }
  0x26   :  { %1129 = dma.done.wait [#allocation9], 256  }
  0x27   :  { %1130 = vsyncadd [#allocation9], 4294967040  ;;  %s1141_s12 = smov [#allocation3]   ;;  %s1083_s16 = scalar_lea.hbm %s1389_s2, 1024 }
  0x28   :  { %s53_s13 = sshll.u32 %s1141_s12, 4  ;;  %p1084_p2 = scmp.ne.s32.totalorder %s1389_s2, %s1083_s16  ;;  %s54_s13 = int_to_ptr.vmem [resolvable:$true] %s53_s13 }
  0x29   :  { %p1087_p3 = scmp.lt.u32.totalorder %s1083_s16, %s1389_s2 }
  0x2b   :  { %p1089_p4 = pnand %p1087_p3, %p1084_p2 }
  0x2d   :  { %1092 = shalt.err (!%p1089_p4)  }
  0x2e   :  { %s1093_s1 = scalar_lea.vmem %s54_s13, 1024  ;;  %p1098_p6 = scmp.lt.s32.totalorder %s54_s13, %s54_s13 }
  0x2f   :  { %p1094_p5 = scmp.ne.s32.totalorder %s54_s13, %s1093_s1  ;;  %p1099_p7 = scmp.lt.s32.totalorder %s1093_s1, %s1093_s1 }
  0x31   :  { %p1100_p8 = por %p1099_p7, %p1098_p6 }
  0x33   :  { %p1101_p9 = pnand %p1100_p8, %p1094_p5 }
  0x35   :  { %1104 = shalt.err (!%p1101_p9)  }
  0x36   :  { %56 = dma.hbm_to_vmem [thread:$0]  %s1389_s2, 1024, %s54_s13, [#allocation4]  ;;  %v1204_v0 = vld [vmem:[#allocation8] sm:$0xff]  ;;  %v1206_v1 = vld [vmem:[#allocation8 + $0x8] sm:$0xff] }
  0x37   :  { %1131 = dma.done.wait [#allocation4], 1024 }
  0x38   :  { %1132 = vsyncadd [#allocation4], 4294966272  ;;  %v1142_v2 = vmov 0.0   ;;  %vm1143_vm0 = vmmov 0   ;;  %v1214_v3 = vld [vmem:[#allocation3] sm:$0xff]  ;;  %v1219_v4 = vld [vmem:[#allocation3 + $0x8] sm:$0xff]  ;;  %v67_v11 = vpack.c.bf16 %v1206_v1, %v1204_v0 }
  0x39   :  { %869 = vmatprep.subr.bf16.mxu0 %v1142_v2  ;;  %885 = vmatprep.mubr.msk.bf16.mxu0 %vm1143_vm0, %v1142_v2  ;;  %v1225_v5 = vld [vmem:[#allocation3 + $0x10] sm:$0xff]  ;;  %v1231_v6 = vld [vmem:[#allocation3 + $0x18] sm:$0xff]  ;;  %v1237_v7 = vld [vmem:[#allocation3 + $0x20] sm:$0xff]  ;;  %v123_v22 = vmul.f32 0.8, %v1204_v0  ;;  %s1144_s2 = smov [#allocation10]  }
  0x3a   :  { %889 = vmatprep.subr.bf16.mxu1 %v1142_v2  ;;  %905 = vmatprep.mubr.msk.bf16.mxu1 %vm1143_vm0, %v1142_v2  ;;  %v1243_v8 = vld [vmem:[#allocation3 + $0x28] sm:$0xff]  ;;  %v1249_v9 = vld [vmem:[#allocation3 + $0x30] sm:$0xff]  ;;  %v1255_v10 = vld [vmem:[#allocation3 + $0x38] sm:$0xff]  ;;  %v124_v24 = vmul.f32 0.8, %v1206_v1  ;;  %s673_s25 = sshll.u32 %s1144_s2, 4  ;;  %s674_s25 = int_to_ptr.vmem [resolvable:$true] %s673_s25 }
  0x3b   :  { %870 = vmatpush3.bf16.msra.mxu0 %v1214_v3  ;;  %890 = vmatpush3.bf16.msra.mxu1 %v1214_v3  ;;  %v726_v12 = vld [vmem:[#allocation5] sm:$0xff]   ;;  %v735_v30 = vld [vmem:[#allocation5 + $0x8] sm:$0xff]   ;;  %v744_v48 = vld [vmem:[#allocation5 + $0x10] sm:$0xff]   ;;  %s1105_s26 = scalar_lea.vmem %s674_s25, 1024  ;;  %p1110_p11 = scmp.lt.s32.totalorder %s674_s25, %s674_s25 }
  0x3c   :  { %871 = vmatprep.subr.bf16.mxu0 %v1142_v2  ;;  %891 = vmatprep.subr.bf16.mxu1 %v1142_v2  ;;  %v727_v13 = vunpack.c.l.bf16 %v726_v12  ;;  %v728_v14 = vunpack.c.h.bf16 %v726_v12  ;;  %v736_v31 = vunpack.c.l.bf16 %v735_v30  ;;  %v737_v32 = vunpack.c.h.bf16 %v735_v30  ;;  %p1106_p10 = scmp.ne.s32.totalorder %s674_s25, %s1105_s26  ;;  %p1111_p12 = scmp.lt.s32.totalorder %s1105_s26, %s1105_s26 }
  0x3d   :  { %v745_v49 = vunpack.c.l.bf16 %v744_v48  ;;  %v746_v50 = vunpack.c.h.bf16 %v744_v48 }
  0x3e   :  { %p1112_p13 = por %p1111_p12, %p1110_p11 }
  0x3f   :  { %872 = vmatpush3.bf16.msra.mxu0 %v1219_v4  ;;  %892 = vmatpush3.bf16.msra.mxu1 %v1219_v4 }
  0x40   :  { %873 = vmatprep.subr.bf16.mxu0 %v1142_v2  ;;  %893 = vmatprep.subr.bf16.mxu1 %v1142_v2  ;;  %p1113_p0 = pnand %p1112_p13, %p1106_p10 }
  0x43   :  { %874 = vmatpush3.bf16.msra.mxu0 %v1225_v5  ;;  %894 = vmatpush3.bf16.msra.mxu1 %v1225_v5 }
  0x44   :  { %875 = vmatprep.subr.bf16.mxu0 %v1142_v2  ;;  %895 = vmatprep.subr.bf16.mxu1 %v1142_v2 }
  0x47   :  { %876 = vmatpush3.bf16.msra.mxu0 %v1231_v6  ;;  %896 = vmatpush3.bf16.msra.mxu1 %v1231_v6 }
  0x48   :  { %877 = vmatprep.subr.bf16.mxu0 %v1142_v2  ;;  %897 = vmatprep.subr.bf16.mxu1 %v1142_v2 }
  0x4b   :  { %878 = vmatpush3.bf16.msra.mxu0 %v1237_v7  ;;  %898 = vmatpush3.bf16.msra.mxu1 %v1237_v7 }
  0x4c   :  { %879 = vmatprep.subr.bf16.mxu0 %v1142_v2  ;;  %899 = vmatprep.subr.bf16.mxu1 %v1142_v2 }
  0x4f   :  { %880 = vmatpush3.bf16.msra.mxu0 %v1243_v8  ;;  %900 = vmatpush3.bf16.msra.mxu1 %v1243_v8 }
  0x50   :  { %881 = vmatprep.subr.bf16.mxu0 %v1142_v2  ;;  %901 = vmatprep.subr.bf16.mxu1 %v1142_v2 }
  0x53   :  { %882 = vmatpush3.bf16.msra.mxu0 %v1249_v9  ;;  %902 = vmatpush3.bf16.msra.mxu1 %v1249_v9 }
  0x54   :  { %883 = vmatprep.subr.bf16.mxu0 %v1142_v2  ;;  %903 = vmatprep.subr.bf16.mxu1 %v1142_v2 }
  0x57   :  { %884 = vmatpush3.bf16.msra.mxu0 %v1255_v10  ;;  %904 = vmatpush3.bf16.msra.mxu1 %v1255_v10 }
  0x58   :  { %909 = vmatprep.subr.bf16.mxu0 %v1142_v2  ;;  %929 = vmatprep.subr.bf16.mxu1 %v1142_v2 }
  0x5a   :  { %886 = vmatmul.mubr.bf16.vlgmr.msra.gmra.mrb[0].mxu0 %v67_v11  ;;  %v753_v11 = vld [vmem:[#allocation5 + $0x18] sm:$0xff]  }
  0x5b   :  { %910 = vmatpush3.bf16.msra.mxu0 %v1214_v3  ;;  %925 = vmatprep.mubr.msk.bf16.mxu0 %vm1143_vm0, %v1142_v2  ;;  %v754_v12 = vunpack.c.l.bf16 %v753_v11 }
  0x5c   :  { %911 = vmatprep.subr.bf16.mxu0 %v1142_v2 }
  0x5f   :  { %912 = vmatpush3.bf16.msra.mxu0 %v1219_v4 }
  0x60   :  { %913 = vmatprep.subr.bf16.mxu0 %v1142_v2 }
  0x63   :  { %914 = vmatpush3.bf16.msra.mxu0 %v1225_v5 }
  0x64   :  { %915 = vmatprep.subr.bf16.mxu0 %v1142_v2 }
  0x67   :  { %916 = vmatpush3.bf16.msra.mxu0 %v1231_v6 }
  0x68   :  { %917 = vmatprep.subr.bf16.mxu0 %v1142_v2 }
  0x6b   :  { %918 = vmatpush3.bf16.msra.mxu0 %v1237_v7 }
  0x6c   :  { %919 = vmatprep.subr.bf16.mxu0 %v1142_v2 }
  0x6f   :  { %920 = vmatpush3.bf16.msra.mxu0 %v1243_v8 }
  0x70   :  { %921 = vmatprep.subr.bf16.mxu0 %v1142_v2 }
  0x73   :  { %922 = vmatpush3.bf16.msra.mxu0 %v1249_v9 }
  0x74   :  { %923 = vmatprep.subr.bf16.mxu0 %v1142_v2 }
  0x77   :  { %924 = vmatpush3.bf16.msra.mxu0 %v1255_v10 }
  0x78   :  { %949 = vmatprep.subr.bf16.mxu0 %v1142_v2 }
 0x12d   :  { %v110_v15 = vpop.f32.mrb[0].mxu0 }
 0x12e   :  { %v121_v16 = vadd.f32 %v727_v13, %v110_v15  ;;  %v887_v17 = vpop.f32.mrb[1].mxu0  ;;  %v755_v13 = vunpack.c.h.bf16 %v753_v11 }
 0x12f   :  { %v113_v18 = vpop.f32.mrb[2].mxu0 }
 0x130   :  { %v125_v19 = vmax.f32 %v121_v16, 0.0  ;;  %v122_v20 = vadd.f32 %v728_v14, %v113_v18  ;;  %v888_v21 = vpop.f32.mrb[3].mxu0 }
 0x132   :  { %v127_v23 = vmul.f32 0.2, %v125_v19  ;;  %v126_v25 = vmax.f32 %v122_v20, 0.0 }
 0x134   :  { %v128_v26 = vmul.f32 0.2, %v126_v25  ;;  %v129_v27 = vadd.f32 %v127_v23, %v123_v22 }
 0x136   :  { %v130_v28 = vadd.f32 %v128_v26, %v124_v24  ;;  %v197_v40 = vmul.f32 0.8, %v129_v27 }
 0x138   :  { %v131_v29 = vpack.c.bf16 %v130_v28, %v129_v27  ;;  %v198_v44 = vmul.f32 0.8, %v130_v28 }
 0x13a   :  { %733 = vst [vmem:[#allocation10] sm:$0xff] %v131_v29   ;;  %906 = vmatmul.mubr.bf16.vlgmr.msra.gmra.mrb[0].mxu1 %v131_v29  ;;  %v762_v29 = vld [vmem:[#allocation5 + $0x20] sm:$0xff]  }
 0x13b   :  { %930 = vmatpush3.bf16.msra.mxu1 %v1214_v3  ;;  %945 = vmatprep.mubr.msk.bf16.mxu1 %vm1143_vm0, %v1142_v2  ;;  %v763_v30 = vunpack.c.l.bf16 %v762_v29 }
 0x13c   :  { %931 = vmatprep.subr.bf16.mxu1 %v1142_v2 }
 0x13f   :  { %932 = vmatpush3.bf16.msra.mxu1 %v1219_v4 }
 0x140   :  { %933 = vmatprep.subr.bf16.mxu1 %v1142_v2 }
 0x143   :  { %934 = vmatpush3.bf16.msra.mxu1 %v1225_v5 }
 0x144   :  { %935 = vmatprep.subr.bf16.mxu1 %v1142_v2 }
 0x147   :  { %936 = vmatpush3.bf16.msra.mxu1 %v1231_v6 }
 0x148   :  { %937 = vmatprep.subr.bf16.mxu1 %v1142_v2 }
 0x14b   :  { %938 = vmatpush3.bf16.msra.mxu1 %v1237_v7 }
 0x14c   :  { %939 = vmatprep.subr.bf16.mxu1 %v1142_v2 }
 0x14f   :  { %940 = vmatpush3.bf16.msra.mxu1 %v1243_v8 }
 0x150   :  { %941 = vmatprep.subr.bf16.mxu1 %v1142_v2 }
 0x153   :  { %942 = vmatpush3.bf16.msra.mxu1 %v1249_v9 }
 0x154   :  { %943 = vmatprep.subr.bf16.mxu1 %v1142_v2 }
 0x157   :  { %944 = vmatpush3.bf16.msra.mxu1 %v1255_v10 }
 0x158   :  { %969 = vmatprep.subr.bf16.mxu1 %v1142_v2 }
 0x20d   :  { %v183_v33 = vpop.f32.mrb[0].mxu1 }
 0x20e   :  { %v195_v34 = vadd.f32 %v736_v31, %v183_v33  ;;  %v907_v35 = vpop.f32.mrb[1].mxu1  ;;  %v764_v31 = vunpack.c.h.bf16 %v762_v29 }
 0x20f   :  { %v186_v36 = vpop.f32.mrb[2].mxu1 }
 0x210   :  { %v199_v37 = vmax.f32 %v195_v34, 0.0  ;;  %v196_v38 = vadd.f32 %v737_v32, %v186_v36  ;;  %v908_v39 = vpop.f32.mrb[3].mxu1 }
 0x212   :  { %v201_v41 = vmul.f32 0.2, %v199_v37  ;;  %v200_v42 = vmax.f32 %v196_v38, 0.0 }
 0x214   :  { %v203_v43 = vadd.f32 %v201_v41, %v197_v40  ;;  %v202_v45 = vmul.f32 0.2, %v200_v42 }
 0x216   :  { %v204_v46 = vadd.f32 %v202_v45, %v198_v44  ;;  %v272_v58 = vmul.f32 0.8, %v203_v43 }
 0x218   :  { %v205_v47 = vpack.c.bf16 %v204_v46, %v203_v43  ;;  %v273_v62 = vmul.f32 0.8, %v204_v46 }
 0x21a   :  { %742 = vst [vmem:[#allocation10 + $0x8] sm:$0xff] %v205_v47   ;;  %926 = vmatmul.mubr.bf16.vlgmr.msra.gmra.mrb[4].mxu0 %v205_v47 }
 0x21b   :  { %950 = vmatpush3.bf16.msra.mxu0 %v1214_v3  ;;  %965 = vmatprep.mubr.msk.bf16.mxu0 %vm1143_vm0, %v1142_v2 }
 0x21c   :  { %951 = vmatprep.subr.bf16.mxu0 %v1142_v2 }
 0x21f   :  { %952 = vmatpush3.bf16.msra.mxu0 %v1219_v4 }
 0x220   :  { %953 = vmatprep.subr.bf16.mxu0 %v1142_v2 }
 0x223   :  { %954 = vmatpush3.bf16.msra.mxu0 %v1225_v5 }
 0x224   :  { %955 = vmatprep.subr.bf16.mxu0 %v1142_v2 }
 0x227   :  { %956 = vmatpush3.bf16.msra.mxu0 %v1231_v6 }
 0x228   :  { %957 = vmatprep.subr.bf16.mxu0 %v1142_v2 }
 0x22b   :  { %958 = vmatpush3.bf16.msra.mxu0 %v1237_v7 }
 0x22c   :  { %959 = vmatprep.subr.bf16.mxu0 %v1142_v2 }
 0x22f   :  { %960 = vmatpush3.bf16.msra.mxu0 %v1243_v8 }
 0x230   :  { %961 = vmatprep.subr.bf16.mxu0 %v1142_v2 }
 0x233   :  { %962 = vmatpush3.bf16.msra.mxu0 %v1249_v9 }
 0x234   :  { %963 = vmatprep.subr.bf16.mxu0 %v1142_v2 }
 0x237   :  { %964 = vmatpush3.bf16.msra.mxu0 %v1255_v10 }
 0x238   :  { %989 = vmatprep.subr.bf16.mxu0 %v1142_v2 }
 0x2ed   :  { %v258_v51 = vpop.f32.mrb[4].mxu0 }
 0x2ee   :  { %v270_v52 = vadd.f32 %v745_v49, %v258_v51  ;;  %v927_v53 = vpop.f32.mrb[5].mxu0 }
 0x2ef   :  { %v261_v54 = vpop.f32.mrb[6].mxu0 }
 0x2f0   :  { %v274_v55 = vmax.f32 %v270_v52, 0.0  ;;  %v271_v56 = vadd.f32 %v746_v50, %v261_v54  ;;  %v928_v57 = vpop.f32.mrb[7].mxu0 }
 0x2f2   :  { %v276_v59 = vmul.f32 0.2, %v274_v55  ;;  %v275_v60 = vmax.f32 %v271_v56, 0.0 }
 0x2f4   :  { %v278_v61 = vadd.f32 %v276_v59, %v272_v58  ;;  %v277_v63 = vmul.f32 0.2, %v275_v60 }
 0x2f6   :  { %v279_v0 = vadd.f32 %v277_v63, %v273_v62  ;;  %v347_v21 = vmul.f32 0.8, %v278_v61 }
 0x2f8   :  { %v280_v1 = vpack.c.bf16 %v279_v0, %v278_v61  ;;  %v348_v25 = vmul.f32 0.8, %v279_v0 }
 0x2fa   :  { %751 = vst [vmem:[#allocation10 + $0x10] sm:$0xff] %v280_v1   ;;  %946 = vmatmul.mubr.bf16.vlgmr.msra.gmra.mrb[4].mxu1 %v280_v1 }
 0x2fb   :  { %970 = vmatpush3.bf16.msra.mxu1 %v1214_v3  ;;  %985 = vmatprep.mubr.msk.bf16.mxu1 %vm1143_vm0, %v1142_v2 }
 0x2fc   :  { %971 = vmatprep.subr.bf16.mxu1 %v1142_v2 }
 0x2ff   :  { %972 = vmatpush3.bf16.msra.mxu1 %v1219_v4 }
 0x300   :  { %973 = vmatprep.subr.bf16.mxu1 %v1142_v2 }
 0x303   :  { %974 = vmatpush3.bf16.msra.mxu1 %v1225_v5 }
 0x304   :  { %975 = vmatprep.subr.bf16.mxu1 %v1142_v2 }
 0x307   :  { %976 = vmatpush3.bf16.msra.mxu1 %v1231_v6 }
 0x308   :  { %977 = vmatprep.subr.bf16.mxu1 %v1142_v2 }
 0x30b   :  { %978 = vmatpush3.bf16.msra.mxu1 %v1237_v7 }
 0x30c   :  { %979 = vmatprep.subr.bf16.mxu1 %v1142_v2 }
 0x30f   :  { %980 = vmatpush3.bf16.msra.mxu1 %v1243_v8 }
 0x310   :  { %981 = vmatprep.subr.bf16.mxu1 %v1142_v2 }
 0x313   :  { %982 = vmatpush3.bf16.msra.mxu1 %v1249_v9 }
 0x314   :  { %983 = vmatprep.subr.bf16.mxu1 %v1142_v2 }
 0x317   :  { %984 = vmatpush3.bf16.msra.mxu1 %v1255_v10 }
 0x318   :  { %1009 = vmatprep.subr.bf16.mxu1 %v1142_v2 }
 0x3cd   :  { %v333_v14 = vpop.f32.mrb[4].mxu1 }
 0x3ce   :  { %v345_v15 = vadd.f32 %v754_v12, %v333_v14  ;;  %v947_v16 = vpop.f32.mrb[5].mxu1 }
 0x3cf   :  { %v336_v17 = vpop.f32.mrb[6].mxu1 }
 0x3d0   :  { %v349_v18 = vmax.f32 %v345_v15, 0.0  ;;  %v346_v19 = vadd.f32 %v755_v13, %v336_v17  ;;  %v948_v20 = vpop.f32.mrb[7].mxu1 }
 0x3d2   :  { %v351_v22 = vmul.f32 0.2, %v349_v18  ;;  %v350_v23 = vmax.f32 %v346_v19, 0.0  ;;  %v789_v19 = vld [vmem:[#allocation5 + $0x38] sm:$0xff]  }
 0x3d3   :  { %v790_v20 = vunpack.c.l.bf16 %v789_v19 }
 0x3d4   :  { %v353_v24 = vadd.f32 %v351_v22, %v347_v21  ;;  %v352_v26 = vmul.f32 0.2, %v350_v23  ;;  %v791_v21 = vunpack.c.h.bf16 %v789_v19 }
 0x3d6   :  { %v354_v27 = vadd.f32 %v352_v26, %v348_v25  ;;  %v422_v39 = vmul.f32 0.8, %v353_v24 }
 0x3d8   :  { %v355_v28 = vpack.c.bf16 %v354_v27, %v353_v24  ;;  %v423_v43 = vmul.f32 0.8, %v354_v27 }
 0x3da   :  { %760 = vst [vmem:[#allocation10 + $0x18] sm:$0xff] %v355_v28   ;;  %966 = vmatmul.mubr.bf16.vlgmr.msra.gmra.mrb[8].mxu0 %v355_v28 }
 0x3db   :  { %990 = vmatpush3.bf16.msra.mxu0 %v1214_v3  ;;  %1005 = vmatprep.mubr.msk.bf16.mxu0 %vm1143_vm0, %v1142_v2 }
 0x3dc   :  { %991 = vmatprep.subr.bf16.mxu0 %v1142_v2 }
 0x3df   :  { %992 = vmatpush3.bf16.msra.mxu0 %v1219_v4 }
 0x3e0   :  { %993 = vmatprep.subr.bf16.mxu0 %v1142_v2 }
 0x3e3   :  { %994 = vmatpush3.bf16.msra.mxu0 %v1225_v5 }
 0x3e4   :  { %995 = vmatprep.subr.bf16.mxu0 %v1142_v2 }
 0x3e7   :  { %996 = vmatpush3.bf16.msra.mxu0 %v1231_v6 }
 0x3e8   :  { %997 = vmatprep.subr.bf16.mxu0 %v1142_v2 }
 0x3eb   :  { %998 = vmatpush3.bf16.msra.mxu0 %v1237_v7 }
 0x3ec   :  { %999 = vmatprep.subr.bf16.mxu0 %v1142_v2 }
 0x3ef   :  { %1000 = vmatpush3.bf16.msra.mxu0 %v1243_v8 }
 0x3f0   :  { %1001 = vmatprep.subr.bf16.mxu0 %v1142_v2 }
 0x3f3   :  { %1002 = vmatpush3.bf16.msra.mxu0 %v1249_v9 }
 0x3f4   :  { %1003 = vmatprep.subr.bf16.mxu0 %v1142_v2 }
 0x3f7   :  { %1004 = vmatpush3.bf16.msra.mxu0 %v1255_v10 }
 0x4ad   :  { %v408_v32 = vpop.f32.mrb[8].mxu0 }
 0x4ae   :  { %v420_v33 = vadd.f32 %v763_v30, %v408_v32  ;;  %v967_v34 = vpop.f32.mrb[9].mxu0 }
 0x4af   :  { %v411_v35 = vpop.f32.mrb[10].mxu0 }
 0x4b0   :  { %v424_v36 = vmax.f32 %v420_v33, 0.0  ;;  %v421_v37 = vadd.f32 %v764_v31, %v411_v35  ;;  %v968_v38 = vpop.f32.mrb[11].mxu0 }
 0x4b2   :  { %v426_v40 = vmul.f32 0.2, %v424_v36  ;;  %v425_v41 = vmax.f32 %v421_v37, 0.0 }
 0x4b4   :  { %v428_v42 = vadd.f32 %v426_v40, %v422_v39  ;;  %v427_v44 = vmul.f32 0.2, %v425_v41 }
 0x4b6   :  { %v429_v45 = vadd.f32 %v427_v44, %v423_v43  ;;  %v497_v52 = vmul.f32 0.8, %v428_v42 }
 0x4b8   :  { %v430_v46 = vpack.c.bf16 %v429_v45, %v428_v42  ;;  %v498_v55 = vmul.f32 0.8, %v429_v45 }
 0x4ba   :  { %769 = vst [vmem:[#allocation10 + $0x20] sm:$0xff] %v430_v46   ;;  %986 = vmatmul.mubr.bf16.vlgmr.msra.gmra.mrb[8].mxu1 %v430_v46 }
 0x4bb   :  { %1010 = vmatpush3.bf16.msra.mxu1 %v1214_v3  ;;  %1025 = vmatprep.mubr.msk.bf16.mxu1 %vm1143_vm0, %v1142_v2  ;;  %v771_v3 = vld [vmem:[#allocation5 + $0x28] sm:$0xff]  }
 0x4bc   :  { %1011 = vmatprep.subr.bf16.mxu1 %v1142_v2 }
 0x4bf   :  { %1012 = vmatpush3.bf16.msra.mxu1 %v1219_v4  ;;  %v772_v4 = vunpack.c.l.bf16 %v771_v3 }
 0x4c0   :  { %1013 = vmatprep.subr.bf16.mxu1 %v1142_v2 }
 0x4c3   :  { %1014 = vmatpush3.bf16.msra.mxu1 %v1225_v5  ;;  %v773_v5 = vunpack.c.h.bf16 %v771_v3 }
 0x4c4   :  { %1015 = vmatprep.subr.bf16.mxu1 %v1142_v2 }
 0x4c7   :  { %1016 = vmatpush3.bf16.msra.mxu1 %v1231_v6 }
 0x4c8   :  { %1017 = vmatprep.subr.bf16.mxu1 %v1142_v2 }
 0x4cb   :  { %1018 = vmatpush3.bf16.msra.mxu1 %v1237_v7 }
 0x4cc   :  { %1019 = vmatprep.subr.bf16.mxu1 %v1142_v2 }
 0x4cf   :  { %1020 = vmatpush3.bf16.msra.mxu1 %v1243_v8 }
 0x4d0   :  { %1021 = vmatprep.subr.bf16.mxu1 %v1142_v2 }
 0x4d3   :  { %1022 = vmatpush3.bf16.msra.mxu1 %v1249_v9 }
 0x4d4   :  { %1023 = vmatprep.subr.bf16.mxu1 %v1142_v2 }
 0x4d7   :  { %1024 = vmatpush3.bf16.msra.mxu1 %v1255_v10  ;;  %v780_v10 = vld [vmem:[#allocation5 + $0x30] sm:$0xff]  }
 0x4d8   :  { %v781_v57 = vunpack.c.l.bf16 %v780_v10  ;;  %v782_v58 = vunpack.c.h.bf16 %v780_v10 }
 0x58d   :  { %v483_v6 = vpop.f32.mrb[8].mxu1 }
 0x58e   :  { %v495_v47 = vadd.f32 %v772_v4, %v483_v6  ;;  %v987_v48 = vpop.f32.mrb[9].mxu1 }
 0x58f   :  { %v486_v49 = vpop.f32.mrb[10].mxu1 }
 0x590   :  { %v499_v7 = vmax.f32 %v495_v47, 0.0  ;;  %v496_v50 = vadd.f32 %v773_v5, %v486_v49  ;;  %v988_v51 = vpop.f32.mrb[11].mxu1 }
 0x592   :  { %v501_v8 = vmul.f32 0.2, %v499_v7  ;;  %v500_v53 = vmax.f32 %v496_v50, 0.0 }
 0x594   :  { %v503_v54 = vadd.f32 %v501_v8, %v497_v52  ;;  %v502_v9 = vmul.f32 0.2, %v500_v53 }
 0x596   :  { %v504_v56 = vadd.f32 %v502_v9, %v498_v55  ;;  %v572_v11 = vmul.f32 0.8, %v503_v54 }
 0x598   :  { %v505_v2 = vpack.c.bf16 %v504_v56, %v503_v54  ;;  %v573_v15 = vmul.f32 0.8, %v504_v56 }
 0x59a   :  { %778 = vst [vmem:[#allocation10 + $0x28] sm:$0xff] %v505_v2   ;;  %1006 = vmatmul.mubr.bf16.vlgmr.msra.gmra.mrb[12].mxu0 %v505_v2 }
 0x66d   :  { %v558_v59 = vpop.f32.mrb[12].mxu0 }
 0x66e   :  { %v570_v60 = vadd.f32 %v781_v57, %v558_v59  ;;  %v1007_v61 = vpop.f32.mrb[13].mxu0 }
 0x66f   :  { %v561_v62 = vpop.f32.mrb[14].mxu0 }
 0x670   :  { %v574_v63 = vmax.f32 %v570_v60, 0.0  ;;  %v571_v0 = vadd.f32 %v782_v58, %v561_v62  ;;  %v1008_v1 = vpop.f32.mrb[15].mxu0 }
 0x672   :  { %v576_v12 = vmul.f32 0.2, %v574_v63  ;;  %v575_v13 = vmax.f32 %v571_v0, 0.0 }
 0x674   :  { %v578_v14 = vadd.f32 %v576_v12, %v572_v11  ;;  %v577_v16 = vmul.f32 0.2, %v575_v13 }
 0x676   :  { %v579_v17 = vadd.f32 %v577_v16, %v573_v15  ;;  %v647_v29 = vmul.f32 0.8, %v578_v14 }
 0x678   :  { %v580_v18 = vpack.c.bf16 %v579_v17, %v578_v14  ;;  %v648_v33 = vmul.f32 0.8, %v579_v17 }
 0x67a   :  { %787 = vst [vmem:[#allocation10 + $0x30] sm:$0xff] %v580_v18   ;;  %1026 = vmatmul.mubr.bf16.vlgmr.msra.gmra.mrb[12].mxu1 %v580_v18 }
 0x74d   :  { %v633_v22 = vpop.f32.mrb[12].mxu1 }
 0x74e   :  { %v645_v23 = vadd.f32 %v790_v20, %v633_v22  ;;  %v1027_v24 = vpop.f32.mrb[13].mxu1 }
 0x74f   :  { %v636_v25 = vpop.f32.mrb[14].mxu1 }
 0x750   :  { %v649_v26 = vmax.f32 %v645_v23, 0.0  ;;  %v646_v27 = vadd.f32 %v791_v21, %v636_v25  ;;  %v1028_v28 = vpop.f32.mrb[15].mxu1 }
 0x752   :  { %v651_v30 = vmul.f32 0.2, %v649_v26  ;;  %v650_v31 = vmax.f32 %v646_v27, 0.0 }
 0x754   :  { %v653_v32 = vadd.f32 %v651_v30, %v647_v29  ;;  %v652_v34 = vmul.f32 0.2, %v650_v31 }
 0x756   :  { %v654_v35 = vadd.f32 %v652_v34, %v648_v33 }
 0x758   :  { %v795_v36 = vpack.c.bf16 %v654_v35, %v653_v32 }
 0x75a   :  { %796 = vst [vmem:[#allocation10 + $0x38] sm:$0xff] %v795_v36  }
 0x75b   :  { %1116 = shalt.err (!%p1113_p0)
}
 0x75c   :  { %s1117_s29 = scalar_lea.hbm %s1390_s3, 1024 }
 0x75d   :  { %p1118_p1 = scmp.ne.s32.totalorder %s1390_s3, %s1117_s29  ;;  %p1121_p2 = scmp.lt.u32.totalorder %s1117_s29, %s1390_s3 }
 0x75f   :  { %p1123_p3 = pnand %p1121_p2, %p1118_p1 }
 0x761   :  { %1126 = shalt.err (!%p1123_p3)
}
 0x762   :  { %679 = dma.vmem_to_hbm [thread:$0]  %s674_s25, 1024, %s1390_s3, [#allocation7], %s1136_s22, %s1136_s22, %s1137_s23  }
 0x763   :  { %1133 = dma.done.wait [#allocation7], 1024  }
 0x764   :  { %1134 = vsyncadd [#allocation7], 4294966272 }
 0x765   :  { %683 = vsyncpa [#allocation6], 1 }
 0x766   :  { %684 = vsyncpa [#allocation9], 1 }
 0x767   :  { %685 = vsyncpa [#allocation7], 1 }
 0x768   :  { %686 = vsyncmov [#allocation4] }
 0x76b   :  { %s687_s0 = vpop.sfrf %686 }
 0x76c   :  { %p708_p4 = scmp.ne.s32.totalorder %s687_s0, 0 }
 0x76e   :  { %691 = shalt.err (%p708_p4)  }

</bundles_post_ra>
